<compile_context>
chip_gen: v6e
topology: v6e:2x2x1
jax: 0.10.0
libtpu: 0.0.40
codegen_flags: <defaults>
</compile_context>

<pallas_src>
import functools

import jax
import jax.numpy as jnp
from jax.experimental import pallas as pl
from jax.experimental.pallas import tpu as pltpu

EPS = 1e-5
CLAMP_LO = -1.0e15
CLAMP_HI = 1.0e15
LEAK_SLOPE = 1e-2

_LANE = 128
_SUBLANE = 8
_MAX_BLOCK_BYTES = 2 << 20  # ~2 MiB f32 per x-block -> in+out double-buffered
                            # pipeline stays well under scoped VMEM on all chips
_MAX_ROW_TILE = 512


def _clamped_instance_norm_kernel(x_ref, w_ref, b_ref, o_ref, *, inv_t):
    # x_ref block: (row_tile, T); w_ref/b_ref: (row_tile, 1)
    x = x_ref[...].astype(jnp.float32)

    # leaky clamp (identity for |x| < 1e15, plus leaky tail beyond the bounds)
    clamped = jnp.clip(x, CLAMP_LO, CLAMP_HI)
    x = clamped + LEAK_SLOPE * (x - clamped)

    # single-pass statistics over the time axis (block covers the full T)
    s = jnp.sum(x, axis=-1, keepdims=True)               # (R, 1)
    ss = jnp.sum(x * x, axis=-1, keepdims=True)          # (R, 1)
    mean = s * inv_t
    var = jnp.maximum(ss * inv_t - mean * mean, 0.0)      # guard cancellation
    inv_std = jax.lax.rsqrt(var + EPS)

    # fold normalize + affine into a single per-element FMA
    scale = inv_std * w_ref[...].astype(jnp.float32)      # (R, 1)
    shift = b_ref[...].astype(jnp.float32) - mean * scale
    o_ref[...] = (x * scale + shift).astype(o_ref.dtype)


def clamped_instance_norm_1d(x, weight, bias):
    """x: (N, C, T); weight/bias: (C,). Returns (N, C, T)."""
    N, C, T = x.shape
    rows = N * C

    # VMEM footprint of one block row (last dim padded to 128 lanes internally)
    t_vmem = pl.cdiv(T, _LANE) * _LANE
    max_rows = max(_SUBLANE,
                   (_MAX_BLOCK_BYTES // (t_vmem * 4)) // _SUBLANE * _SUBLANE)
    cap = min(max_rows, _MAX_ROW_TILE)

    if rows <= cap:
        row_tile = rows           # block == full row extent (always legal)
    else:
        row_tile = cap            # multiple of 8; ragged last block is masked
    grid = (pl.cdiv(rows, row_tile),)

    # free reshape (contiguous); NO host-side padding or post-slice copies
    x2 = x.reshape(rows, T)

    # per-row weight/bias (row r corresponds to channel r % C) -- tiny arrays
    w2 = jnp.tile(weight.astype(jnp.float32), N).reshape(rows, 1)
    b2 = jnp.tile(bias.astype(jnp.float32), N).reshape(rows, 1)

    kernel = functools.partial(_clamped_instance_norm_kernel, inv_t=1.0 / T)

    out = pl.pallas_call(
        kernel,
        out_shape=jax.ShapeDtypeStruct((rows, T), x.dtype),
        grid_spec=pltpu.PrefetchScalarGridSpec(
            num_scalar_prefetch=0,
            grid=grid,
            in_specs=[
                pl.BlockSpec((row_tile, T), lambda i: (i, 0)),
                pl.BlockSpec((row_tile, 1), lambda i: (i, 0)),
                pl.BlockSpec((row_tile, 1), lambda i: (i, 0)),
            ],
            out_specs=pl.BlockSpec((row_tile, T), lambda i: (i, 0)),
        ),
        compiler_params=pltpu.CompilerParams(
            dimension_semantics=("parallel",),
            vmem_limit_bytes=32 << 20,
        ),
    )(x2, w2, b2)

    return out.reshape(N, C, T)


def _reference(x, weight, bias):
    clamped = jnp.clip(x, CLAMP_LO, CLAMP_HI)
    xl = clamped + LEAK_SLOPE * (x - clamped)
    mean = jnp.mean(xl, axis=2, keepdims=True)
    var = jnp.mean((xl - mean) ** 2, axis=2, keepdims=True)
    y = (xl - mean) / jnp.sqrt(var + EPS)
    return y * weight.reshape(1, -1, 1) + bias.reshape(1, -1, 1)


if __name__ == "__main__":
    key = jax.random.PRNGKey(0)
    k1, k2, k3, k4 = jax.random.split(key, 4)

    # case 1: small shape from the module convention (batch=2, channels=4, T=16)
    N, C, T = 2, 4, 16
    x = jax.random.normal(k1, (N, C, T), dtype=jnp.float32)
    weight = 1.0 + 0.1 * jax.random.normal(k2, (C,), dtype=jnp.float32)
    bias = 0.1 * jax.random.normal(k3, (C,), dtype=jnp.float32)

    out = jax.block_until_ready(clamped_instance_norm_1d(x, weight, bias))
    ref = _reference(x, weight, bias)
    assert jnp.allclose(out, ref, atol=1e-4, rtol=1e-5), "mismatch (case 1)"

    # case 2: rows not a multiple of 8, T not a multiple of 128, default params
    N2, C2, T2 = 3, 5, 200
    x2 = jax.random.normal(k4, (N2, C2, T2), dtype=jnp.float32)
    w2 = jnp.ones((C2,), dtype=jnp.float32)   # InstanceNorm1d init: weight=1
    b2 = jnp.zeros((C2,), dtype=jnp.float32)  # InstanceNorm1d init: bias=0

    out2 = jax.block_until_ready(clamped_instance_norm_1d(x2, w2, b2))
    ref2 = _reference(x2, w2, b2)
    assert jnp.allclose(out2, ref2, atol=1e-4, rtol=1e-5), "mismatch (case 2)"

    print("KERNEL_OK")
</pallas_src>

<mosaic_0001>
module attributes {stable_mosaic.version = 11 : i64} {
  func.func @_clamped_instance_norm_kernel(%arg0: i32, %arg1: memref<8x16xf32, #tpu.memory_space<vmem>>, %arg2: memref<8x1xf32, #tpu.memory_space<vmem>>, %arg3: memref<8x1xf32, #tpu.memory_space<vmem>>, %arg4: memref<8x16xf32, #tpu.memory_space<vmem>>) attributes {dimension_semantics = [#tpu.dimension_semantics<parallel>], iteration_bounds = array<i64: 1>, scalar_prefetch = 0 : i64, scratch_operands = 0 : i64, tpu.core_type = #tpu.core_type<tc>, window_params = [{transform_indices = @transform_0, window_bounds = array<i64: 8, 16>}, {transform_indices = @transform_1, window_bounds = array<i64: 8, 1>}, {transform_indices = @transform_2, window_bounds = array<i64: 8, 1>}, {transform_indices = @transform_3, window_bounds = array<i64: 8, 16>}]} {
    %c0 = arith.constant 0 : index
    %c0_0 = arith.constant 0 : index
    %0 = vector.load %arg1[%c0, %c0_0] : memref<8x16xf32, #tpu.memory_space<vmem>>, vector<8x16xf32>
    %cst = arith.constant -9.99999986E+14 : f32
    %cst_1 = arith.constant 9.99999986E+14 : f32
    %1 = vector.broadcast %cst : f32 to vector<8x16xf32>
    %2 = arith.maximumf %1, %0 : vector<8x16xf32>
    %3 = vector.broadcast %cst_1 : f32 to vector<8x16xf32>
    %4 = arith.minimumf %3, %2 : vector<8x16xf32>
    %5 = arith.subf %0, %4 : vector<8x16xf32>
    %cst_2 = arith.constant 0.00999999977 : f32
    %6 = vector.broadcast %cst_2 : f32 to vector<8x16xf32>
    %7 = arith.mulf %6, %5 : vector<8x16xf32>
    %8 = arith.addf %4, %7 : vector<8x16xf32>
    %cst_3 = arith.constant dense<0.000000e+00> : vector<8xf32>
    %9 = vector.multi_reduction <add>, %8, %cst_3 [1] : vector<8x16xf32> to vector<8xf32>
    %10 = vector.shape_cast %9 : vector<8xf32> to vector<8x1xf32>
    %11 = arith.mulf %8, %8 : vector<8x16xf32>
    %cst_4 = arith.constant dense<0.000000e+00> : vector<8xf32>
    %12 = vector.multi_reduction <add>, %11, %cst_4 [1] : vector<8x16xf32> to vector<8xf32>
    %13 = vector.shape_cast %12 : vector<8xf32> to vector<8x1xf32>
    %cst_5 = arith.constant 6.250000e-02 : f32
    %14 = vector.broadcast %cst_5 : f32 to vector<8x1xf32>
    %15 = arith.mulf %10, %14 : vector<8x1xf32>
    %cst_6 = arith.constant 6.250000e-02 : f32
    %16 = vector.broadcast %cst_6 : f32 to vector<8x1xf32>
    %17 = arith.mulf %13, %16 : vector<8x1xf32>
    %18 = arith.mulf %15, %15 : vector<8x1xf32>
    %19 = arith.subf %17, %18 : vector<8x1xf32>
    %cst_7 = arith.constant 0.000000e+00 : f32
    %20 = vector.broadcast %cst_7 : f32 to vector<8x1xf32>
    %21 = arith.maximumf %19, %20 : vector<8x1xf32>
    %cst_8 = arith.constant 9.99999974E-6 : f32
    %22 = vector.broadcast %cst_8 : f32 to vector<8x1xf32>
    %23 = arith.addf %21, %22 : vector<8x1xf32>
    %24 = math.rsqrt %23 : vector<8x1xf32>
    %c0_9 = arith.constant 0 : index
    %c0_10 = arith.constant 0 : index
    %25 = vector.load %arg2[%c0_9, %c0_10] : memref<8x1xf32, #tpu.memory_space<vmem>>, vector<8x1xf32>
    %26 = arith.mulf %24, %25 : vector<8x1xf32>
    %c0_11 = arith.constant 0 : index
    %c0_12 = arith.constant 0 : index
    %27 = vector.load %arg3[%c0_11, %c0_12] : memref<8x1xf32, #tpu.memory_space<vmem>>, vector<8x1xf32>
    %28 = arith.mulf %15, %26 : vector<8x1xf32>
    %29 = arith.subf %27, %28 : vector<8x1xf32>
    %30 = vector.broadcast %26 : vector<8x1xf32> to vector<8x16xf32>
    %31 = arith.mulf %8, %30 : vector<8x16xf32>
    %32 = vector.broadcast %29 : vector<8x1xf32> to vector<8x16xf32>
    %33 = arith.addf %31, %32 : vector<8x16xf32>
    %c0_13 = arith.constant 0 : index
    %c0_14 = arith.constant 0 : index
    %34 = vector.load %arg4[%c0_13, %c0_14] : memref<8x16xf32, #tpu.memory_space<vmem>>, vector<8x16xf32>
    tpu.vector_store %arg4[%c0_13, %c0_14], %33 {strides = array<i32>} : memref<8x16xf32, #tpu.memory_space<vmem>>, vector<8x16xf32>,
    return
  }
  func.func @transform_0(%arg0: i32) -> (i32, i32) {
    %c0_i32 = arith.constant 0 : i32
    %c0_i32_0 = arith.constant 0 : i32
    return %arg0, %c0_i32 : i32, i32
  }
  func.func @transform_1(%arg0: i32) -> (i32, i32) {
    %c0_i32 = arith.constant 0 : i32
    %c0_i32_0 = arith.constant 0 : i32
    return %arg0, %c0_i32 : i32, i32
  }
  func.func @transform_2(%arg0: i32) -> (i32, i32) {
    %c0_i32 = arith.constant 0 : i32
    %c0_i32_0 = arith.constant 0 : i32
    return %arg0, %c0_i32 : i32, i32
  }
  func.func @transform_3(%arg0: i32) -> (i32, i32) {
    %c0_i32 = arith.constant 0 : i32
    %c0_i32_0 = arith.constant 0 : i32
    return %arg0, %c0_i32 : i32, i32
  }
}

</mosaic_0001>

<bundles_post_ra>
// kernel: tpu_custom_call.1
= control target key start
LH: loop header
LB: loop body
LE: loop exit
PB: predicated region body
PF: predicated region fallthrough
CT: control target
= control target key end

     0   :  { %s134_s0 = inlined_call_operand.vmem [shape: f32[8,16], index: 0, kind: input, shape index: {}]   ;;  %s135_s1 = inlined_call_operand.vmem [shape: f32[8,1], index: 1, kind: input, shape index: {}]   ;;  %s136_s2 = inlined_call_operand.vmem [shape: f32[8,1], index: 2, kind: input, shape index: {}]   ;;  %s137_s3 = inlined_call_operand.hbm [shape: f32[8,16], index: 3, kind: output, shape index: {}]  }
   0x1   :  { %v15_v0 = vld [vmem:[%s134_s0] sm:$0xff] }
   0x2   :  { %8 = vsyncpa [#allocation3], 0  ;;  %v68_v1 = vclamps-f32 %v15_v0, 1e+15  ;;  %vm21_vm0 = vcmask 130048   ;;  %v97_v8 = vmov 0  }
   0x3   :  { %71 = vset.pattern.permute.xlu1 %v97_v8  ;;  %72 = vset.pattern.permute.xlu0 %v97_v8  ;;  %v36_v17 = vld [vmem:[%s135_s1] sm:$0xff]  ;;  %s98_s17 = smov [#allocation2]  }
   0x4   :  { %v18_v2 = vsub.f32 %v15_v0, %v68_v1  ;;  %v38_v20 = vld [vmem:[%s136_s2] sm:$0xff]  ;;  %s60_s18 = sshll.u32 %s98_s17, 4  ;;  %s61_s18 = int_to_ptr.vmem [resolvable:$true] %s60_s18 }
   0x5   :  { %s75_s1 = scalar_lea.vmem %s61_s18, 128  ;;  %p80_p1 = scmp.lt.s32.totalorder %s61_s18, %s61_s18 }
   0x6   :  { %v19_v3 = vmul.f32 0.01, %v18_v2  ;;  %p76_p0 = scmp.ne.s32.totalorder %s61_s18, %s75_s1  ;;  %p81_p2 = scmp.lt.s32.totalorder %s75_s1, %s75_s1 }
   0x8   :  { %v20_v4 = vadd.f32 %v68_v1, %v19_v3  ;;  %p82_p3 = por %p81_p2, %p80_p1 }
   0xa   :  { %v22_v5 = vsel %vm21_vm0, %v20_v4, 0.0  ;;  %v25_v6 = vmul.f32 %v20_v4, %v20_v4  ;;  %p83_p4 = pnand %p82_p3, %p76_p0 }
   0xb   :  { %23 = vadd.xlane.f32.xlu0 %v22_v5 }
   0xc   :  { %v26_v7 = vsel %vm21_vm0, %v25_v6, 0.0 }
   0xf   :  { %27 = vadd.xlane.f32.xlu0 %v26_v7 }
  0x94   :  { %v24_v9 = vpop.xlane.xlu0 %23 }
  0x95   :  { %v29_v10 = vmul.f32 0.0625, %v24_v9 }
  0x97   :  { %v31_v12 = vmul.f32 %v29_v10, %v29_v10 }
  0x98   :  { %v28_v11 = vpop.xlane.xlu0 %27 }
  0x99   :  { %v30_v13 = vmul.f32 0.0625, %v28_v11 }
  0x9b   :  { %v32_v14 = vsub.f32 %v30_v13, %v31_v12 }
  0x9d   :  { %v33_v15 = vmax.f32 %v32_v14, 0.0 }
  0x9f   :  { %v34_v16 = vadd.f32 1e-05, %v33_v15 }
  0xa1   :  { %73 = vrsqrt.f32 %v34_v16 }
  0xae   :  { %v74_v18 = vpop.eup %73 }
  0xaf   :  { %v37_v19 = vmul.f32 %v74_v18, %v36_v17 }
  0xb1   :  { %43 = vperm.xlu1 %71, %v37_v19   ;;  %v39_v21 = vmul.f32 %v37_v19, %v29_v10 }
  0xb3   :  { %v40_v22 = vsub.f32 %v38_v20, %v39_v21 }
  0xb5   :  { %49 = vperm.xlu1 %71, %v40_v22  }
 0x12c   :  { %v44_v23 = vpop.permute.xlu1 %43 }
 0x12d   :  { %v46_v24 = vmul.f32 %v44_v23, %v20_v4 }
 0x130   :  { %v50_v25 = vpop.permute.xlu1 %49 }
 0x131   :  { %v52_v26 = vadd.f32 %v50_v25, %v46_v24 }
 0x133   :  { %53 = vst.msk [vmem:[#allocation2] sm:$0xff] %vm21_vm0, %v52_v26 }
 0x134   :  { %86 = shalt.err (!%p83_p4)
}
 0x135   :  { %63 = dma.vmem_to_hbm [thread:$0]  %s61_s18, 128, %s137_s3, [#allocation3]  }
 0x136   :  { %95 = dma.done.wait [#allocation3], 128  }
 0x137   :  { %96 = vsyncadd [#allocation3], 4294967168 }
 0x138   :  { %67 = vsyncpa [#allocation3], 1 }

</bundles_post_ra>
